<compile_context>
chip_gen: v5e
topology: v5e:2x2
jax: 0.10.0
libtpu: 0.0.40
codegen_flags: <defaults>
</compile_context>

<pallas_src>
import functools

import jax
import jax.numpy as jnp
from jax.experimental import pallas as pl
from jax.experimental.pallas import tpu as pltpu


def ncf_mlp_kernel(ue_ref, ie_ref,
                   w1u_ref, w1i_ref, b1_ref,
                   w2_ref, b2_ref,
                   w3_ref, b3_ref,
                   w4_ref, b4_ref,
                   out_ref):
    ue = ue_ref[...]          # [TB, D]  (compute dtype: f32 or bf16)
    ie = ie_ref[...]          # [TB, D]

    # fc1 on the fused concat; activations transposed to [H1, TB] (batch -> lanes).
    # einsum contracts the last dims of both operands -> no explicit transpose op.
    h = (jnp.einsum("od,bd->ob", w1u_ref[...], ue,
                    preferred_element_type=jnp.float32)
         + jnp.einsum("od,bd->ob", w1i_ref[...], ie,
                      preferred_element_type=jnp.float32)
         + b1_ref[...])                                            # [H1, TB] f32
    h = jnp.maximum(h, 0.0)

    # fc2 + ReLU -> [H2, TB]
    h = jnp.dot(w2_ref[...], h.astype(w2_ref.dtype),
                preferred_element_type=jnp.float32) + b2_ref[...]
    h = jnp.maximum(h, 0.0)

    # fc3 + ReLU -> [H3, TB]
    h = jnp.dot(w3_ref[...], h.astype(w3_ref.dtype),
                preferred_element_type=jnp.float32) + b3_ref[...]
    h = jnp.maximum(h, 0.0)

    # fc4 (output width 1): VPU multiply + sublane reduce instead of an M=1 MXU pass.
    y = jnp.sum(h * w4_ref[...], axis=0, keepdims=True) + b4_ref[...]   # [1, TB]
    out_ref[...] = y.astype(out_ref.dtype)


def prepare_params(params, compute_dtype=jnp.float32):
    """One-time weight-layout prep, hoisted out of the per-call path.

    Matmul operands are stored in `compute_dtype` (f32, or bf16 for v6e/v7x HBM savings);
    biases and the tiny fc4 column stay f32 (f32 accumulation / VPU path).
    """
    D = params["emb_user"].shape[1]
    w1 = params["w1"]                                            # [H1, 2D] (PyTorch [out, in])
    return {
        "emb_user": params["emb_user"].astype(compute_dtype),
        "emb_item": params["emb_item"].astype(compute_dtype),
        "w1u": w1[:, :D].astype(compute_dtype),                  # [H1, D]
        "w1i": w1[:, D:].astype(compute_dtype),                  # [H1, D]
        "w2": params["w2"].astype(compute_dtype),                # [H2, H1]
        "w3": params["w3"].astype(compute_dtype),                # [H3, H2]
        "w4": params["w4"].reshape(-1, 1).astype(jnp.float32),   # [H3, 1] column
        "b1": params["b1"].reshape(-1, 1).astype(jnp.float32),   # [H1, 1]
        "b2": params["b2"].reshape(-1, 1).astype(jnp.float32),   # [H2, 1]
        "b3": params["b3"].reshape(-1, 1).astype(jnp.float32),   # [H3, 1]
        "b4": params["b4"].reshape(1, 1).astype(jnp.float32),    # [1, 1]
    }


@functools.partial(jax.jit, static_argnames=("block_b",))
def mlp_forward(user_indices, item_indices, prepped, *, block_b=512):
    """Reproduces MLP.forward(user_indices, item_indices) -> [B, 1] float32."""
    B = user_indices.shape[0]
    D = prepped["w1u"].shape[1]
    H1 = prepped["w1u"].shape[0]
    H2 = prepped["w2"].shape[0]
    H3 = prepped["w3"].shape[0]

    # Batch tile: single full-batch tile when small; otherwise 128-multiple tiles so the
    # lane-dense output block and the (TB, D) embedding blocks satisfy the (8,128) rules.
    if B <= block_b:
        TB = B
        B_pad = B
    else:
        TB = block_b
        if TB % 128 != 0:
            raise ValueError("block_b must be a multiple of 128 when B > block_b")
        B_pad = TB * ((B + TB - 1) // TB)

    u_idx, i_idx = user_indices, item_indices
    if B_pad != B:
        u_idx = jnp.pad(u_idx, (0, B_pad - B))
        i_idx = jnp.pad(i_idx, (0, B_pad - B))

    # Embedding gathers (JAX glue); rows are then streamed tile-by-tile into the kernel.
    ue = jnp.take(prepped["emb_user"], u_idx, axis=0)    # [B_pad, D]
    ie = jnp.take(prepped["emb_item"], i_idx, axis=0)    # [B_pad, D]

    weights = (prepped["w1u"], prepped["w1i"], prepped["b1"],
               prepped["w2"], prepped["b2"],
               prepped["w3"], prepped["b3"],
               prepped["w4"], prepped["b4"])

    emb_spec = pl.BlockSpec((TB, D), lambda i: (i, 0))
    resident = lambda arr: pl.BlockSpec(arr.shape, lambda i: (0, 0))  # VMEM-resident
    out_spec = pl.BlockSpec((1, TB), lambda i: (0, i))                # lane-dense output

    emb_itemsize = jnp.dtype(ue.dtype).itemsize
    flops = 2 * B_pad * (2 * D * H1 + H1 * H2 + H2 * H3 + H3)
    bytes_accessed = (2 * B_pad * D * emb_itemsize
                      + sum(w.size * jnp.dtype(w.dtype).itemsize for w in weights)
                      + B_pad * 4)

    out = pl.pallas_call(
        ncf_mlp_kernel,
        out_shape=jax.ShapeDtypeStruct((1, B_pad), jnp.float32),
        grid=(B_pad // TB,),
        in_specs=[emb_spec, emb_spec] + [resident(w) for w in weights],
        out_specs=out_spec,
        compiler_params=pltpu.CompilerParams(
            dimension_semantics=("parallel",),        # batch axis shards across TCs (v7x)
            vmem_limit_bytes=32 * 1024 * 1024),
        cost_estimate=pl.CostEstimate(flops=flops, transcendentals=0,
                                      bytes_accessed=bytes_accessed),
    )(ue, ie, *weights)

    return out[0, :B].reshape(B, 1)


def init_params(key, num_users, num_items, embedding_dim):
    """Deterministic parameter init mirroring PyTorch defaults' shapes/distributions."""
    D = embedding_dim
    H1, H2, H3 = D // 2, D // 4, D // 8
    keys = jax.random.split(key, 10)

    def linear_init(kw, kb, fan_in, fan_out):
        bound = 1.0 / jnp.sqrt(jnp.float32(fan_in))
        w = jax.random.uniform(kw, (fan_out, fan_in), jnp.float32, -bound, bound)
        b = jax.random.uniform(kb, (fan_out,), jnp.float32, -bound, bound)
        return w, b

    params = {}
    params["emb_user"] = jax.random.normal(keys[0], (num_users, D), jnp.float32)
    params["emb_item"] = jax.random.normal(keys[1], (num_items, D), jnp.float32)
    params["w1"], params["b1"] = linear_init(keys[2], keys[3], 2 * D, H1)
    params["w2"], params["b2"] = linear_init(keys[4], keys[5], H1, H2)
    params["w3"], params["b3"] = linear_init(keys[6], keys[7], H2, H3)
    params["w4"], params["b4"] = linear_init(keys[8], keys[9], H3, 1)
    return params


def reference_forward(user_indices, item_indices, params):
    """Pure-JAX reference matching the PyTorch forward exactly."""
    ue = params["emb_user"][user_indices]
    ie = params["emb_item"][item_indices]
    v = jnp.concatenate([ue, ie], axis=-1)
    x = jnp.maximum(v @ params["w1"].T + params["b1"], 0.0)
    x = jnp.maximum(x @ params["w2"].T + params["b2"], 0.0)
    x = jnp.maximum(x @ params["w3"].T + params["b3"], 0.0)
    x = x @ params["w4"].T + params["b4"]
    return x


if __name__ == "__main__":
    num_users, num_items, embedding_dim = 10, 12, 32
    batch = 16

    key = jax.random.PRNGKey(0)
    pkey, ukey, ikey, ukey2, ikey2 = jax.random.split(key, 5)
    params = init_params(pkey, num_users, num_items, embedding_dim)

    user_indices = jax.random.randint(ukey, (batch,), 0, num_users, dtype=jnp.int32)
    item_indices = jax.random.randint(ikey, (batch,), 0, num_items, dtype=jnp.int32)
    ref = reference_forward(user_indices, item_indices, params)

    # 1) f32 path, single batch tile.
    prepped = prepare_params(params, jnp.float32)
    out = jax.block_until_ready(mlp_forward(user_indices, item_indices, prepped))
    assert out.shape == (batch, 1), out.shape
    assert jnp.allclose(out, ref, atol=1e-5, rtol=1e-5), (out, ref)

    # 2) bf16-operand path (v6e/v7x HBM-bytes optimization), f32 accumulation.
    prepped_bf16 = prepare_params(params, jnp.bfloat16)
    out_bf16 = jax.block_until_ready(mlp_forward(user_indices, item_indices, prepped_bf16))
    assert out_bf16.shape == (batch, 1), out_bf16.shape
    assert jnp.allclose(out_bf16, ref, atol=1e-1, rtol=1e-1), (out_bf16, ref)

    # 3) Multi-tile grid + batch-padding path (streamed embeddings, resident weights).
    big_batch = 300
    ub = jax.random.randint(ukey2, (big_batch,), 0, num_users, dtype=jnp.int32)
    ib = jax.random.randint(ikey2, (big_batch,), 0, num_items, dtype=jnp.int32)
    ref_big = reference_forward(ub, ib, params)
    out_big = jax.block_until_ready(mlp_forward(ub, ib, prepped, block_b=128))
    assert out_big.shape == (big_batch, 1), out_big.shape
    assert jnp.allclose(out_big, ref_big, atol=1e-5, rtol=1e-5), (out_big, ref_big)

    print("KERNEL_OK")
</pallas_src>

<mosaic_0001>
module attributes {stable_mosaic.version = 11 : i64} {
  func.func @ncf_mlp_kernel(%arg0: i32, %arg1: memref<16x32xf32, #tpu.memory_space<vmem>>, %arg2: memref<16x32xf32, #tpu.memory_space<vmem>>, %arg3: memref<16x32xf32, #tpu.memory_space<vmem>>, %arg4: memref<16x32xf32, #tpu.memory_space<vmem>>, %arg5: memref<16x1xf32, #tpu.memory_space<vmem>>, %arg6: memref<8x16xf32, #tpu.memory_space<vmem>>, %arg7: memref<8x1xf32, #tpu.memory_space<vmem>>, %arg8: memref<4x8xf32, #tpu.memory_space<vmem>>, %arg9: memref<4x1xf32, #tpu.memory_space<vmem>>, %arg10: memref<4x1xf32, #tpu.memory_space<vmem>>, %arg11: memref<1x1xf32, #tpu.memory_space<vmem>>, %arg12: memref<1x16xf32, #tpu.memory_space<vmem>>) attributes {dimension_semantics = [#tpu.dimension_semantics<parallel>], iteration_bounds = array<i64: 1>, scalar_prefetch = 0 : i64, scratch_operands = 0 : i64, tpu.core_type = #tpu.core_type<tc>, window_params = [{transform_indices = @transform_0, window_bounds = array<i64: 16, 32>}, {transform_indices = @transform_1, window_bounds = array<i64: 16, 32>}, {pipeline_mode = #tpu.pipeline_mode<synchronous>, transform_indices = @transform_2, window_bounds = array<i64: 16, 32>}, {pipeline_mode = #tpu.pipeline_mode<synchronous>, transform_indices = @transform_3, window_bounds = array<i64: 16, 32>}, {pipeline_mode = #tpu.pipeline_mode<synchronous>, transform_indices = @transform_4, window_bounds = array<i64: 16, 1>}, {pipeline_mode = #tpu.pipeline_mode<synchronous>, transform_indices = @transform_5, window_bounds = array<i64: 8, 16>}, {pipeline_mode = #tpu.pipeline_mode<synchronous>, transform_indices = @transform_6, window_bounds = array<i64: 8, 1>}, {pipeline_mode = #tpu.pipeline_mode<synchronous>, transform_indices = @transform_7, window_bounds = array<i64: 4, 8>}, {pipeline_mode = #tpu.pipeline_mode<synchronous>, transform_indices = @transform_8, window_bounds = array<i64: 4, 1>}, {pipeline_mode = #tpu.pipeline_mode<synchronous>, transform_indices = @transform_9, window_bounds = array<i64: 4, 1>}, {pipeline_mode = #tpu.pipeline_mode<synchronous>, transform_indices = @transform_10, window_bounds = array<i64: 1, 1>}, {transform_indices = @transform_11, window_bounds = array<i64: 1, 16>}]} {
    %c0 = arith.constant 0 : index
    %c0_0 = arith.constant 0 : index
    %0 = vector.load %arg1[%c0, %c0_0] : memref<16x32xf32, #tpu.memory_space<vmem>>, vector<16x32xf32>
    %c0_1 = arith.constant 0 : index
    %c0_2 = arith.constant 0 : index
    %1 = vector.load %arg2[%c0_1, %c0_2] : memref<16x32xf32, #tpu.memory_space<vmem>>, vector<16x32xf32>
    %c0_3 = arith.constant 0 : index
    %c0_4 = arith.constant 0 : index
    %2 = vector.load %arg3[%c0_3, %c0_4] : memref<16x32xf32, #tpu.memory_space<vmem>>, vector<16x32xf32>
    "tpu.trace_start"() <{level = 10 : i32, message = "od,bd->ob"}> : () -> ()
    %cst = arith.constant dense<0.000000e+00> : vector<16x16xf32>
    %3 = tpu.matmul %2, %0, %cst {dimension_numbers = #tpu.dot_dimension_numbers<[1], [1], [0], [0], [0, 0, 1, 0], [], []>} : vector<16x32xf32>, vector<16x32xf32>, vector<16x16xf32> -> vector<16x16xf32>
    "tpu.trace_stop"() : () -> ()
    %c0_5 = arith.constant 0 : index
    %c0_6 = arith.constant 0 : index
    %4 = vector.load %arg4[%c0_5, %c0_6] : memref<16x32xf32, #tpu.memory_space<vmem>>, vector<16x32xf32>
    "tpu.trace_start"() <{level = 10 : i32, message = "od,bd->ob"}> : () -> ()
    %cst_7 = arith.constant dense<0.000000e+00> : vector<16x16xf32>
    %5 = tpu.matmul %4, %1, %cst_7 {dimension_numbers = #tpu.dot_dimension_numbers<[1], [1], [0], [0], [0, 0, 1, 0], [], []>} : vector<16x32xf32>, vector<16x32xf32>, vector<16x16xf32> -> vector<16x16xf32>
    "tpu.trace_stop"() : () -> ()
    %6 = arith.addf %3, %5 : vector<16x16xf32>
    %c0_8 = arith.constant 0 : index
    %c0_9 = arith.constant 0 : index
    %7 = vector.load %arg5[%c0_8, %c0_9] : memref<16x1xf32, #tpu.memory_space<vmem>>, vector<16x1xf32>
    %8 = vector.broadcast %7 : vector<16x1xf32> to vector<16x16xf32>
    %9 = arith.addf %6, %8 : vector<16x16xf32>
    %cst_10 = arith.constant 0.000000e+00 : f32
    %10 = vector.broadcast %cst_10 : f32 to vector<16x16xf32>
    %11 = arith.maximumf %9, %10 : vector<16x16xf32>
    %c0_11 = arith.constant 0 : index
    %c0_12 = arith.constant 0 : index
    %12 = vector.load %arg6[%c0_11, %c0_12] : memref<8x16xf32, #tpu.memory_space<vmem>>, vector<8x16xf32>
    %cst_13 = arith.constant dense<0.000000e+00> : vector<8x16xf32>
    %13 = tpu.matmul %12, %11, %cst_13 {dimension_numbers = #tpu.dot_dimension_numbers<[1], [0], [0], [1], [0, 0, 1, 1], [], []>} : vector<8x16xf32>, vector<16x16xf32>, vector<8x16xf32> -> vector<8x16xf32>
    %c0_14 = arith.constant 0 : index
    %c0_15 = arith.constant 0 : index
    %14 = vector.load %arg7[%c0_14, %c0_15] : memref<8x1xf32, #tpu.memory_space<vmem>>, vector<8x1xf32>
    %15 = vector.broadcast %14 : vector<8x1xf32> to vector<8x16xf32>
    %16 = arith.addf %13, %15 : vector<8x16xf32>
    %cst_16 = arith.constant 0.000000e+00 : f32
    %17 = vector.broadcast %cst_16 : f32 to vector<8x16xf32>
    %18 = arith.maximumf %16, %17 : vector<8x16xf32>
    %c0_17 = arith.constant 0 : index
    %c0_18 = arith.constant 0 : index
    %19 = vector.load %arg8[%c0_17, %c0_18] : memref<4x8xf32, #tpu.memory_space<vmem>>, vector<4x8xf32>
    %cst_19 = arith.constant dense<0.000000e+00> : vector<4x16xf32>
    %20 = tpu.matmul %19, %18, %cst_19 {dimension_numbers = #tpu.dot_dimension_numbers<[1], [0], [0], [1], [0, 0, 1, 1], [], []>} : vector<4x8xf32>, vector<8x16xf32>, vector<4x16xf32> -> vector<4x16xf32>
    %c0_20 = arith.constant 0 : index
    %c0_21 = arith.constant 0 : index
    %21 = vector.load %arg9[%c0_20, %c0_21] : memref<4x1xf32, #tpu.memory_space<vmem>>, vector<4x1xf32>
    %22 = vector.broadcast %21 : vector<4x1xf32> to vector<4x16xf32>
    %23 = arith.addf %20, %22 : vector<4x16xf32>
    %cst_22 = arith.constant 0.000000e+00 : f32
    %24 = vector.broadcast %cst_22 : f32 to vector<4x16xf32>
    %25 = arith.maximumf %23, %24 : vector<4x16xf32>
    %c0_23 = arith.constant 0 : index
    %c0_24 = arith.constant 0 : index
    %26 = vector.load %arg10[%c0_23, %c0_24] : memref<4x1xf32, #tpu.memory_space<vmem>>, vector<4x1xf32>
    %27 = vector.broadcast %26 : vector<4x1xf32> to vector<4x16xf32>
    %28 = arith.mulf %25, %27 : vector<4x16xf32>
    %cst_25 = arith.constant dense<0.000000e+00> : vector<16xf32>
    %29 = vector.multi_reduction <add>, %28, %cst_25 [0] : vector<4x16xf32> to vector<16xf32>
    %30 = vector.shape_cast %29 : vector<16xf32> to vector<1x16xf32>
    %c0_26 = arith.constant 0 : index
    %c0_27 = arith.constant 0 : index
    %31 = vector.load %arg11[%c0_26, %c0_27] : memref<1x1xf32, #tpu.memory_space<vmem>>, vector<1x1xf32>
    %32 = vector.broadcast %31 : vector<1x1xf32> to vector<1x16xf32>
    %33 = arith.addf %30, %32 : vector<1x16xf32>
    %c0_28 = arith.constant 0 : index
    %c0_29 = arith.constant 0 : index
    %34 = vector.load %arg12[%c0_28, %c0_29] : memref<1x16xf32, #tpu.memory_space<vmem>>, vector<1x16xf32>
    tpu.vector_store %arg12[%c0_28, %c0_29], %33 {strides = array<i32>} : memref<1x16xf32, #tpu.memory_space<vmem>>, vector<1x16xf32>,
    return
  }
  func.func @transform_0(%arg0: i32) -> (i32, i32) {
    %c0_i32 = arith.constant 0 : i32
    %c0_i32_0 = arith.constant 0 : i32
    return %arg0, %c0_i32 : i32, i32
  }
  func.func @transform_1(%arg0: i32) -> (i32, i32) {
    %c0_i32 = arith.constant 0 : i32
    %c0_i32_0 = arith.constant 0 : i32
    return %arg0, %c0_i32 : i32, i32
  }
  func.func @transform_2(%arg0: i32) -> (i32, i32) {
    %c0_i32 = arith.constant 0 : i32
    %c0_i32_0 = arith.constant 0 : i32
    %c0_i32_1 = arith.constant 0 : i32
    return %c0_i32, %c0_i32_0 : i32, i32
  }
  func.func @transform_3(%arg0: i32) -> (i32, i32) {
    %c0_i32 = arith.constant 0 : i32
    %c0_i32_0 = arith.constant 0 : i32
    %c0_i32_1 = arith.constant 0 : i32
    return %c0_i32, %c0_i32_0 : i32, i32
  }
  func.func @transform_4(%arg0: i32) -> (i32, i32) {
    %c0_i32 = arith.constant 0 : i32
    %c0_i32_0 = arith.constant 0 : i32
    %c0_i32_1 = arith.constant 0 : i32
    return %c0_i32, %c0_i32_0 : i32, i32
  }
  func.func @transform_5(%arg0: i32) -> (i32, i32) {
    %c0_i32 = arith.constant 0 : i32
    %c0_i32_0 = arith.constant 0 : i32
    %c0_i32_1 = arith.constant 0 : i32
    return %c0_i32, %c0_i32_0 : i32, i32
  }
  func.func @transform_6(%arg0: i32) -> (i32, i32) {
    %c0_i32 = arith.constant 0 : i32
    %c0_i32_0 = arith.constant 0 : i32
    %c0_i32_1 = arith.constant 0 : i32
    return %c0_i32, %c0_i32_0 : i32, i32
  }
  func.func @transform_7(%arg0: i32) -> (i32, i32) {
    %c0_i32 = arith.constant 0 : i32
    %c0_i32_0 = arith.constant 0 : i32
    %c0_i32_1 = arith.constant 0 : i32
    return %c0_i32, %c0_i32_0 : i32, i32
  }
  func.func @transform_8(%arg0: i32) -> (i32, i32) {
    %c0_i32 = arith.constant 0 : i32
    %c0_i32_0 = arith.constant 0 : i32
    %c0_i32_1 = arith.constant 0 : i32
    return %c0_i32, %c0_i32_0 : i32, i32
  }
  func.func @transform_9(%arg0: i32) -> (i32, i32) {
    %c0_i32 = arith.constant 0 : i32
    %c0_i32_0 = arith.constant 0 : i32
    %c0_i32_1 = arith.constant 0 : i32
    return %c0_i32, %c0_i32_0 : i32, i32
  }
  func.func @transform_10(%arg0: i32) -> (i32, i32) {
    %c0_i32 = arith.constant 0 : i32
    %c0_i32_0 = arith.constant 0 : i32
    %c0_i32_1 = arith.constant 0 : i32
    return %c0_i32, %c0_i32_0 : i32, i32
  }
  func.func @transform_11(%arg0: i32) -> (i32, i32) {
    %c0_i32 = arith.constant 0 : i32
    %c0_i32_0 = arith.constant 0 : i32
    return %c0_i32, %arg0 : i32, i32
  }
}

</mosaic_0001>

<bundles_post_ra>
// kernel: mlp_forward.1
= control target key start
LH: loop header
LB: loop body
LE: loop exit
PB: predicated region body
PF: predicated region fallthrough
CT: control target
= control target key end

     0   :  { %s403_s0 = inlined_call_operand.vmem [shape: f32[16,32], index: 0, kind: input, shape index: {}]   ;;  %s404_s1 = inlined_call_operand.vmem [shape: f32[16,32], index: 1, kind: input, shape index: {}]   ;;  %s405_s2 = inlined_call_operand.vmem [shape: f32[16,32], index: 2, kind: input, shape index: {}]   ;;  %s406_s3 = inlined_call_operand.vmem [shape: f32[16,32], index: 3, kind: input, shape index: {}]   ;;  %s407_s4 = inlined_call_operand.vmem [shape: f32[16,1], index: 4, kind: input, shape index: {}]   ;;  %s408_s5 = inlined_call_operand.vmem [shape: f32[8,16], index: 5, kind: input, shape index: {}]   ;;  %s409_s6 = inlined_call_operand.vmem [shape: f32[8,1], index: 6, kind: input, shape index: {}]   ;;  %s410_s7 = inlined_call_operand.vmem [shape: f32[4,8], index: 7, kind: input, shape index: {}]   ;;  %s411_s8 = inlined_call_operand.vmem [shape: f32[4,1], index: 8, kind: input, shape index: {}]   ;;  %s412_s9 = inlined_call_operand.vmem [shape: f32[4,1], index: 9, kind: input, shape index: {}]   ;;  %s413_s10 = inlined_call_operand.<no memory space> [shape: f32[1,1], index: 10, kind: input, shape index: {}]   ;;  %s414_s11 = inlined_call_operand.hbm [shape: f32[1,16], index: 11, kind: output, shape index: {}]  }
   0x1   :  { %v16_v0 = vstv %s413_s10 }
   0x2   :  { %17 = vst [vmem:[#allocation2] sm:$0x1] %v16_v0 }
   0x3   :  { %v44_v1 = vld [vmem:[%s404_s1 + $0x8] sm:$0xff]  ;;  %vm49_vm0 = vcmask 261120   ;;  %v43_v3 = vld [vmem:[%s404_s1] sm:$0xff]  ;;  %v282_v5 = vmov 0  }
   0x4   :  { %v42_v2 = vld [vmem:[%s403_s0 + $0x8] sm:$0xff]  ;;  %241 = vmatpush.xpose.msk.msra.mxu0 %vm49_vm0, %v44_v1  ;;  %v41_v4 = vld [vmem:[%s403_s0] sm:$0xff]  ;;  %253 = vset.pattern.permute.xlu0 %v282_v5 }
   0x5   :  { %245 = vmatpush.xpose.msk.msra.mxu1 %vm49_vm0, %v42_v2  ;;  %v121_v6 = vld [vmem:[%s407_s4 + $0x8] sm:$0xff]  ;;  %254 = vset.pattern.permute.xlu1 %v282_v5 }
   0x6   :  { %129 = vperm.xlu0 %253, %v121_v6   ;;  %255 = vset.pattern.permute.xlu2 %v282_v5 }
   0x7   :  { %18 = vsyncpa [#allocation4], 0  ;;  %v47_v7 = vld [vmem:[%s406_s3] sm:$0xff]  ;;  %v48_v10 = vld [vmem:[%s406_s3 + $0x8] sm:$0xff]  ;;  %vm143_vm1 = vcmask 130048   ;;  %vm175_vm2 = vcmask 64512  }
   0x8   :  { %242 = vmatpush.xpose.msk.msra.mxu0 %vm49_vm0, %v43_v3  ;;  %v45_v8 = vld [vmem:[%s405_s2] sm:$0xff]  ;;  %v46_v11 = vld [vmem:[%s405_s2 + $0x8] sm:$0xff]  ;;  %vm207_vm3 = vcmask 125952   ;;  %s232_s23 = sshll.u32 %s414_s11, 4  ;;  %vm223_vm4 = vcmask 122880   ;;  %s233_s23 = int_to_ptr.hbm [resolvable:$true] %s232_s23 }
   0x9   :  { %246 = vmatpush.xpose.msk.msra.mxu1 %vm49_vm0, %v41_v4  ;;  %v120_v9 = vld [vmem:[%s407_s4] sm:$0xff] }
   0xa   :  { %v137_v12 = vld [vmem:[%s409_s6] sm:$0xff] }
   0xb   :  { %243 = vmatmul.msk.f32.vlgmr.msra.gmra.mxu0 %vm49_vm0, %v47_v7  ;;  %140 = vperm.xlu1 %254, %v137_v12   ;;  %v169_v13 = vld [vmem:[%s411_s8] sm:$0xf] }
   0xc   :  { %247 = vmatmul.msk.f32.vlgmr.msra.gmra.mxu1 %vm49_vm0, %v45_v8  ;;  %v136_v26 = vld [vmem:[%s408_s5] sm:$0xff]  ;;  %s283_s5 = smov [#allocation3]  }
   0xd   :  { %v200_v27 = vld [vmem:[%s412_s9] sm:$0xf]  ;;  %s230_s9 = sshll.u32 %s283_s5, 4  ;;  %s231_s9 = int_to_ptr.vmem [resolvable:$true] %s230_s9 }
   0xe   :  { %124 = vperm.xlu0 %253, %v120_v9   ;;  %203 = vperm.xlu2 %255, %v200_v27   ;;  %v215_v28 = vld [vmem:[#allocation2] sm:$0x1] }
   0xf   :  { %v168_v33 = vld [vmem:[%s410_s7] sm:$0xf] }
  0x13   :  { %244 = vmatmul.msk.f32.gmra.mxu0 %vm49_vm0, %v48_v10  ;;  %172 = vperm.xlu1 %254, %v169_v13  }
  0x14   :  { %248 = vmatmul.msk.f32.gmra.mxu1 %vm49_vm0, %v46_v11 }
  0x16   :  { %218 = vperm.xlu2 %255, %v215_v28  }
  0x68   :  { %v204_v38 = vpop.permute.xlu2 %203 }
  0x70   :  { %v219_v45 = vpop.permute.xlu2 %218 }
  0x71   :  { %v221_v48 = vperm.slane %v219_v45, 0 }
  0x78   :  { %v130_v14 = vpop.permute.xlu0 %129 }
  0x7d   :  { %v141_v29 = vpop.permute.xlu1 %140 }
  0x80   :  { %v125_v18 = vpop.permute.xlu0 %124 }
  0x85   :  { %v173_v34 = vpop.permute.xlu1 %172 }
  0x88   :  { %v79_v15 = vpop.f32.mrf.mxu0 }
  0x89   :  { %v114_v16 = vpop.f32.mrf.mxu1 }
  0x8a   :  { %v115_v17 = vadd.f32 %v114_v16, %v79_v15 }
  0x8c   :  { %v132_v22 = vadd.f32 %v125_v18, %v115_v17 }
  0x8e   :  { %v134_v25 = vmax.f32 %v132_v22, 0.0 }
  0x90   :  { %v82_v19 = vpop.f32.mrf.mxu0 }
  0x91   :  { %v117_v20 = vpop.f32.mrf.mxu1 }
  0x92   :  { %v118_v21 = vadd.f32 %v117_v20, %v82_v19 }
  0x94   :  { %v133_v23 = vadd.f32 %v130_v14, %v118_v21 }
  0x96   :  { %v135_v24 = vmax.f32 %v133_v23, 0.0 }
  0x98   :  { %161 = vmatpush.msra.mxu2 %v135_v24 }
  0x9a   :  { %162 = vmatpush.msra.mxu2 %v134_v25 }
  0x9b   :  { %249 = vmatmul.msk.f32.vlgmr.msra.gmra.mxu2 %vm143_vm1, %v136_v26 }
 0x11e   :  { %v164_v30 = vpop.f32.mrf.mxu2 }
 0x11f   :  { %v165_v31 = vadd.f32 %v164_v30, %v141_v29 }
 0x121   :  { %v167_v32 = vmax.f32 %v165_v31, 0.0 }
 0x123   :  { %194 = vmatpush.msra.mxu3 %v167_v32 }
 0x124   :  { %250 = vmatmul.msk.f32.vlgmr.msra.gmra.mxu3 %vm175_vm2, %v168_v33 }
 0x1a7   :  { %v196_v35 = vpop.f32.mrf.mxu3 }
 0x1a8   :  { %v197_v36 = vadd.f32 %v196_v35, %v173_v34 }
 0x1aa   :  { %v199_v37 = vmax.f32 %v197_v36, 0.0 }
 0x1ac   :  { %v206_v39 = vmul.f32 %v204_v38, %v199_v37 }
 0x1ae   :  { %v208_v40 = vsel %vm207_vm3, %v206_v39, 0.0 }
 0x1af   :  { %v209_v41 = vrot.slane %v208_v40, 4 }
 0x1b1   :  { %v210_v42 = vadd.f32 %v209_v41, %v208_v40 }
 0x1b3   :  { %v211_v43 = vrot.slane %v210_v42, 2 }
 0x1b5   :  { %v212_v44 = vadd.f32 %v211_v43, %v210_v42 }
 0x1b7   :  { %v213_v46 = vrot.slane %v212_v44, 1 }
 0x1b9   :  { %v214_v47 = vadd.f32 %v213_v46, %v212_v44 }
 0x1bb   :  { %v222_v49 = vadd.f32 %v221_v48, %v214_v47 }
 0x1bd   :  { %224 = vst.msk [vmem:[#allocation3] sm:$0x1] %vm223_vm4, %v222_v49 }
 0x1be   :  { %235 = dma.vmem_to_hbm [thread:$0]  %s231_s9, 16, %s233_s23, [#allocation4]  }
 0x1bf   :  { %280 = dma.done.wait [#allocation4], 16  }
 0x1c0   :  { %281 = vsyncadd [#allocation4], 4294967280 }
 0x1c1   :  { %240 = vsyncpa [#allocation4], 1 }

</bundles_post_ra>
